<compile_context>
chip_gen: v5e
topology: v5e:2x2
jax: 0.10.0
libtpu: 0.0.40
codegen_flags: <defaults>
</compile_context>

<pallas_src>
import functools

import jax
import jax.numpy as jnp
from jax.experimental import pallas as pl
from jax.experimental.pallas import tpu as pltpu

N_PAD = 128  # lane-dense padded output width (true out dim is 10)


def mlp_kernel(x_ref, w_ref, o_ref):
    # f32 batch tile cast to bf16 in-kernel (VPU work hidden under DMA); the
    # folded weight already arrives in bf16.  MXU matmul accumulates in f32.
    o_ref[...] = jnp.dot(x_ref[...].astype(jnp.bfloat16), w_ref[...],
                         preferred_element_type=jnp.float32)


def prepare_folded_weight(w1, w2, w3):
    """One-time parameter prep (do NOT call per forward).

    Exact only for the default Network config: activation='Linear', bias=False,
    where the three Linear layers collapse to a single matrix W3 @ W2 @ W1.
    Returns the folded weight in MXU-native [K, N] layout, zero-padded to a
    lane-dense N=128 and cast to bf16, plus the true output dim.
    """
    d_out = w3.shape[0]
    k = w1.shape[1]
    w_folded = (w3 @ w2 @ w1).T                                   # (K, d_out) f32
    w_kn = jnp.zeros((k, N_PAD), jnp.float32).at[:, :d_out].set(w_folded)
    return w_kn.astype(jnp.bfloat16), d_out


def _pick_batch_tile(B):
    # Big tiles amortize the ~0.35 us/grid-step overhead, but keep >= 2 blocks
    # so the "parallel" axis can shard across v7x's two TensorCores.
    if B >= 1024:
        return 512
    return min(512, max(8, -(-((B + 1) // 2) // 8) * 8))


@functools.partial(jax.jit, static_argnames=("d_out",))
def network_forward(x_flat, w_kn_bf16, *, d_out=10):
    """x_flat: (B, 784) float32; w_kn_bf16: (784, 128) bf16 from prepare_folded_weight."""
    B, K = x_flat.shape
    tb = _pick_batch_tile(B)
    n_tiles = pl.cdiv(B, tb)

    cost = pl.CostEstimate(
        flops=2 * B * K * N_PAD,
        transcendentals=0,
        bytes_accessed=B * K * 4 + K * N_PAD * 2 + B * N_PAD * 4,
    )

    out = pl.pallas_call(
        mlp_kernel,
        out_shape=jax.ShapeDtypeStruct((B, N_PAD), jnp.float32),
        grid_spec=pl.GridSpec(
            grid=(n_tiles,),
            in_specs=[
                # Ragged last batch block handled by Pallas edge masking
                # (rows past B produce garbage that never reaches HBM).
                pl.BlockSpec((tb, K), lambda i: (i, 0)),
                # Weight block index never changes -> effectively resident.
                # (pipeline_mode=pl.Buffered(1) would shave a 200 KB dead
                #  buffer; skipped to keep lowering maximally portable.)
                pl.BlockSpec((K, N_PAD), lambda i: (0, 0)),
            ],
            out_specs=pl.BlockSpec((tb, N_PAD), lambda i: (i, 0)),
        ),
        compiler_params=pltpu.CompilerParams(
            dimension_semantics=("parallel",)),
        cost_estimate=cost,
    )(x_flat, w_kn_bf16)

    return out[:, :d_out]


def xavier_uniform(key, out_f, in_f):
    # matches torch.nn.init.xavier_uniform_ for a (out_f, in_f) Linear weight
    bound = jnp.sqrt(6.0 / (in_f + out_f))
    return jax.random.uniform(key, (out_f, in_f), jnp.float32, -bound, bound)


if __name__ == "__main__":
    # Default module config: layers_size = [28*28, 50, 50, 10], 'Linear' activation.
    layers_size = [28 * 28, 50, 50, 10]
    B = 100  # module default batch_size_train; also exercises the ragged last block

    key = jax.random.PRNGKey(0)
    kx, k1, k2, k3 = jax.random.split(key, 4)

    # Input images (B, 1, 28, 28) NCHW, flattened exactly like x.view(B, -1)
    x_img = jax.random.normal(kx, (B, 1, 28, 28), jnp.float32)
    x = x_img.reshape(B, -1)

    w1 = xavier_uniform(k1, layers_size[1], layers_size[0])  # (50, 784)
    w2 = xavier_uniform(k2, layers_size[2], layers_size[1])  # (50, 50)
    w3 = xavier_uniform(k3, layers_size[3], layers_size[2])  # (10, 50)

    # One-time parameter prep, hoisted out of the per-call path.
    w_kn_bf16, d_out = prepare_folded_weight(w1, w2, w3)
    w_kn_bf16 = jax.block_until_ready(w_kn_bf16)

    out = network_forward(x, w_kn_bf16, d_out=d_out)
    out = jax.block_until_ready(out)

    # pure-JAX f32 reference (unfused 3-layer chain, PyTorch semantics)
    ref = ((x @ w1.T) @ w2.T) @ w3.T
    assert out.shape == (B, layers_size[-1])
    # bf16 MXU operands with f32 accumulation -> a few e-3 absolute error on
    # O(1) outputs; tolerance chosen accordingly.
    assert jnp.allclose(out, ref, atol=5e-2, rtol=5e-2)

    # TODO(synk): conv_max_pool / conv_subsample branches, ReLU activation
    # configs, and the training loop are out of scope; only the default
    # bias-free Linear forward is kerneled (the W3@W2@W1 fold relies on it).

    print("KERNEL_OK")
</pallas_src>

<mosaic_0001>
module attributes {stable_mosaic.version = 11 : i64} {
  func.func @mlp_kernel(%arg0: i32, %arg1: memref<56x784xf32, #tpu.memory_space<vmem>>, %arg2: memref<784x128xbf16, #tpu.memory_space<vmem>>, %arg3: memref<56x128xf32, #tpu.memory_space<vmem>>) attributes {dimension_semantics = [#tpu.dimension_semantics<parallel>], iteration_bounds = array<i64: 2>, scalar_prefetch = 0 : i64, scratch_operands = 0 : i64, tpu.core_type = #tpu.core_type<tc>, window_params = [{transform_indices = @transform_0, window_bounds = array<i64: 56, 784>}, {pipeline_mode = #tpu.pipeline_mode<synchronous>, transform_indices = @transform_1, window_bounds = array<i64: 784, 128>}, {transform_indices = @transform_2, window_bounds = array<i64: 56, 128>}]} {
    %c0 = arith.constant 0 : index
    %c0_0 = arith.constant 0 : index
    %0 = vector.load %arg1[%c0, %c0_0] : memref<56x784xf32, #tpu.memory_space<vmem>>, vector<56x784xf32>
    %1 = arith.truncf %0 : vector<56x784xf32> to vector<56x784xbf16>
    %c0_1 = arith.constant 0 : index
    %c0_2 = arith.constant 0 : index
    %2 = vector.load %arg2[%c0_1, %c0_2] : memref<784x128xbf16, #tpu.memory_space<vmem>>, vector<784x128xbf16>
    %cst = arith.constant dense<0.000000e+00> : vector<56x128xf32>
    %3 = tpu.matmul %1, %2, %cst {dimension_numbers = #tpu.dot_dimension_numbers<[1], [0], [0], [1], [0, 0, 1, 1], [], []>} : vector<56x784xbf16>, vector<784x128xbf16>, vector<56x128xf32> -> vector<56x128xf32>
    %c0_3 = arith.constant 0 : index
    %c0_4 = arith.constant 0 : index
    %4 = vector.load %arg3[%c0_3, %c0_4] : memref<56x128xf32, #tpu.memory_space<vmem>>, vector<56x128xf32>
    tpu.vector_store %arg3[%c0_3, %c0_4], %3 {strides = array<i32>} : memref<56x128xf32, #tpu.memory_space<vmem>>, vector<56x128xf32>,
    return
  }
  func.func @transform_0(%arg0: i32) -> (i32, i32) {
    %c0_i32 = arith.constant 0 : i32
    %c0_i32_0 = arith.constant 0 : i32
    return %arg0, %c0_i32 : i32, i32
  }
  func.func @transform_1(%arg0: i32) -> (i32, i32) {
    %c0_i32 = arith.constant 0 : i32
    %c0_i32_0 = arith.constant 0 : i32
    %c0_i32_1 = arith.constant 0 : i32
    return %c0_i32, %c0_i32_0 : i32, i32
  }
  func.func @transform_2(%arg0: i32) -> (i32, i32) {
    %c0_i32 = arith.constant 0 : i32
    %c0_i32_0 = arith.constant 0 : i32
    return %arg0, %c0_i32 : i32, i32
  }
}

</mosaic_0001>

<bundles_post_ra>
// kernel: network_forward.1
= control target key start
LH: loop header
LB: loop body
LE: loop exit
PB: predicated region body
PF: predicated region fallthrough
CT: control target
= control target key end

     0   :  { %7 = vsyncpa [#allocation3], 0  ;;  %s2030_s0 = inlined_call_operand.hbm [shape: f32[100,784], index: 0, kind: input, shape index: {}]   ;;  %s2031_s1 = inlined_call_operand.hbm [shape: bf16[784,128], index: 1, kind: input, shape index: {}]   ;;  %s2032_s2 = inlined_call_operand.vmem [shape: f32[100,128], index: 2, kind: output, shape index: {}]  }
   0x1   :  { %9 = vsyncpa [#allocation3 + $0x1], 0 }
   0x2   :  { %10 = vsyncpa [#allocation5], 0  ;;  %s1754_s9 = smov 0   ;;  %s1756_s10 = smov 0  }
   0x3   :  { %s1758_s11 = smov 0   ;;  %s1760_s12 = smov 0  }
   0x4 LB: > { %s1773_s13 = sadd.s32 4294967295, %s1699_s12   ;;  %s1776_s14 = sadd.s32 1, %s1699_s12   ;;  %s1699_s12 = sphi %s1760_s12, %s2047_s12   ;;  %s1695_s11 = sphi %s1758_s11, %s2046_s11   ;;  %s1691_s10 = sphi %s1756_s10, %s2045_s10   ;;  %s1687_s9 = sphi %s1754_s9, %s2044_s9  }
   0x5   : > { %s20_s15 = ssub.s32 %s1699_s12, %s1776_s14  ;;  %s23_s16 = sadd.s32 1, %s1695_s11 }
   0x6   : > { %p21_p0 = scmp.eq.s32.totalorder %s20_s15, 0  ;;  %p30_p1 = scmp.ne.s32.totalorder %s1695_s11, %s1691_s10 }
   0x7   : > { %p31_p2 = scmp.eq.s32.totalorder %s1699_s12, 0  ;;  %p36_p3 = scmp.ne.s32.totalorder %s1691_s10, %s1687_s9 }
   0x8   : > { %s1786_s17 = scalar_select %p21_p0, %s1695_s11, %s23_s16  }
   0x9   : > { %p1788_p4 = por %p31_p2, %p30_p1  ;;  %p2033_p5 = scmp.eq.s32.totalorder %s1773_s13, 0 }
   0xa   : > { %p81_p6 = scmp.eq.s32.totalorder %s1773_s13, 1  ;;  %p1147_p7 = scmp.ge.s32.totalorder %s1699_s12, 1 }
   0xb   : > { %p1797_p8 = por %p2033_p5, %p36_p3  ;;  %p94_p9 = scmp.lt.s32.totalorder %s1699_s12, 3 }
   0xc   : > { %p1802_p10 = por %p81_p6, %p30_p1  ;;  %s105_s24 = sshll.u32 %s2031_s1, 4  ;;  %s106_s24 = int_to_ptr.hbm [resolvable:$true] %s105_s24 }
   0xd   : > { %p1806_p11 = pnand %p1147_p7, %p94_p9  ;;  %s1733_s25 = smov [#allocation4]  }
   0xe   : > { %s107_s26 = sshll.u32 %s1733_s25, 4  ;;  %s1734_s27 = smov 64   ;;  %s108_s26 = int_to_ptr.vmem [resolvable:$true] %s107_s26 }
   0xf   : > { %p1445_p12 = pneg %p1806_p11  ;;  %s1735_s28 = smov 4  }
  0x10   : > { %p1149_p0 = scmp.ge.s32.totalorder %s1699_s12, 2 }
  0x11   : > { %p1446_p13 = pnand %p1445_p12, %p2033_p5 }
  0x12   : > { %117 = sbr.rel (%p1149_p0) target bundleno = 65 (0x41), region = 20 }
  0x13   : > { %1448 = dma.hbm_to_vmem [thread:$0]  (!%p1446_p13), %s106_s24, 6272, %s108_s26, [#allocation5], %s1734_s27, %s1734_s27, %s1735_s28  }
  0x17   : > { %120 = sbr.rel (!%p1788_p4) target bundleno = 65 (0x41), region = 24  ;;  %s121_s29 = sand.u32 (%p1788_p4), 1, %s1695_s11  }
  0x18   : > { %s126_s30 = smul.u32 (%p1788_p4), 7, %s1699_s12  ;;  %s1822_s8 = scalar_lea.sflag (%p1788_p4), [#allocation3], %s121_s29 }
  0x19   : > { %s1436_s3 = smul.u32 (%p1788_p4), 392, %s121_s29 }
  0x1a   : > { %s127_s4 = ssub.s32 (%p1788_p4), 13, %s126_s30 }
  0x1b   : > { %p128_p1 = scmp.lt.s32.totalorder (%p1788_p4), %s127_s4, 7  ;;  %s125_s9 = scalar_lea.vmem (%p1788_p4), [#allocation2], %s1436_s3 }
  0x1d   : > { %s2049_s4 = smov (!%p128_p1, %s127_s4), 7 }
  0x1e   : > { %s1151_s5 = smul.u32 56, %s2049_s4 }
  0x20   : > { %s132_s6 = ssub.s32 392, %s1151_s5 }
  0x21   : > { %s133_s7 = sshll.u32 %s132_s6, 4 }
  0x22   : > { %134 = vsyncadd %s1822_s8, %s133_s7  ;;  %p1825_p2 = scmp.ne.s32.totalorder %s1151_s5, 0  ;;  %s1450_s16 = smul.u32 392, %s1699_s12 }
  0x23   : > { %s1830_s18 = sshll.u32 %s125_s9, 4  ;;  %s1832_s22 = smul.u32 896, %s2049_s4  ;;  %s143_s18 = int_to_ptr.vmem [resolvable:$true] %s1830_s18 }
  0x24   : > { %s138_s25 = scalar_lea.hbm %s2030_s0, %s1450_s16  ;;  %s1601_s5 = scalar_lea.hbm %s2030_s0, 728 }
  0x25   : > { %s140_s26 = sshll.u32 %s138_s25, 4  ;;  %s1592_s12 = sshrl.u32 %s1832_s22, 4  ;;  %s1838_s26 = int_to_ptr.hbm [resolvable:$true] %s140_s26 }
  0x26   : > { %s1590_s27 = sshra.s32 %s1838_s26, 4  ;;  %s1628_s28 = sshll.u32 %s1592_s12, 4  ;;  %s1591_s27 = int_to_ptr.hbm [resolvable:$true] %s1590_s27 }
  0x27   : > { %p1594_p3 = scmp.ne.s32.totalorder %s1628_s28, %s1832_s22  ;;  %s1595_s29 = sadd.s32 1, %s1592_s12 }
  0x28   : > { %p1602_p9 = scmp.lt.s32.totalorder %s1591_s27, %s2030_s0 }
  0x29   : > { %s2051_s29 = smov (!%p1594_p3, %s1595_s29), %s1592_s12 }
  0x2a   : > { %s1597_s30 = scalar_lea.hbm %s1591_s27, %s2051_s29 }
  0x2b   : > { %p1598_p4 = scmp.ne.s32.totalorder %s1591_s27, %s1597_s30  ;;  %p1603_p12 = scmp.lt.s32.totalorder %s1601_s5, %s1597_s30 }
  0x2d   : > { %p1599_p6 = pnand %p1598_p4, %p1825_p2  ;;  %p1604_p13 = por %p1603_p12, %p1602_p9 }
  0x2f   : > { %p1600_p7 = pneg %p1599_p6 }
  0x31   : > { %p1605_p0 = pnand %p1604_p13, %p1600_p7 }
  0x33   : > { %1608 = shalt.err (!%p1605_p0)
}
  0x34   : > { %s1609_s9 = sshra.s32 %s143_s18, 4  ;;  %s1736_s23 = smov [#allocation2]   ;;  %s1610_s9 = int_to_ptr.vmem [resolvable:$true] %s1609_s9 }
  0x35   : > { %s1616_s16 = scalar_lea.vmem %s1610_s9, %s2051_s29  ;;  %s1620_s24 = scalar_lea.vmem %s1736_s23, 784 }
  0x36   : > { %p1617_p1 = scmp.ne.s32.totalorder %s1610_s9, %s1616_s16  ;;  %p1622_p6 = scmp.lt.s32.totalorder %s1620_s24, %s1616_s16 }
  0x38   : > { %p1618_p3 = pnand %p1617_p1, %p1825_p2 }
  0x3a   : > { %p1619_p4 = pneg %p1618_p3 }
  0x3c   : > { %p1624_p5 = pnand %p1622_p6, %p1619_p4 }
  0x3e   : > { %1627 = shalt.err (!%p1624_p5)
}
  0x3f   : > { %s1737_s25 = smov 896   ;;  %s1738_s27 = smov 56  }
  0x40   : > { %148 = dma.hbm_to_vmem [thread:$0]  (%p1825_p2), %s1838_s26, %s1832_s22, %s143_s18, %s1822_s8, %s1737_s25, %s1737_s25, %s1738_s27  }
  0x41 PF: > { %154 = sbr.rel (%p1806_p11) target bundleno = 401 (0x191), region = 28  ;;  %s1865_s12 = sand.u32 (!%p1806_p11), 1, %s1691_s10  }
  0x42   : > { %s1438_s28 = smul.u32 (!%p1806_p11), 392, %s1865_s12  ;;  %s157_s29 = scalar_lea.sflag (!%p1806_p11), [#allocation3], %s1865_s12 }
  0x44   : > { %s1869_s30 = scalar_lea.vmem (!%p1806_p11), [#allocation2], %s1438_s28 }
  0x46   : > { %1678 = dma.done.wait (%p1797_p8), %s157_s29, 6272  }
  0x47   : > { %1680 = vsyncadd (%p1797_p8), %s157_s29, 4294961024  ;;  %p2039_p5 = scmp.eq.s32.totalorder %s1773_s13, 0 }
  0x49   : > { %1682 = dma.done.wait (%p2039_p5), [#allocation5], 6272   ;;  %p2040_p11 = pmov %p2039_p5 }
  0x4a   : > { %v1376_v0 = vld [vmem:[#allocation4 + $0x38] sm:$0xff]  ;;  %v1375_v3 = vld [vmem:[#allocation4 + $0x30] sm:$0xff]  ;;  %v1374_v6 = vld [vmem:[#allocation4 + $0x28] sm:$0xff]  ;;  %vm667_vm0 = vcmask 130048   ;;  %s1439_s19 = smul.u32 56, %s1865_s12 }
  0x4b   : > { %1684 = vsyncadd (%p2040_p11), [#allocation5], 4294961024  ;;  %v1384_v1 = vld [vmem:[#allocation4 + $0x78] sm:$0xff]  ;;  %680 = vmatpush.bf16.msra.mxu0 %v1376_v0  ;;  %1419 = vmatpush.bf16.msra.mxu3 %v1376_v0  ;;  %v1383_v4 = vld [vmem:[#allocation4 + $0x70] sm:$0xff]  ;;  %s890_s8 = smul.u32 (%p1802_p10), 7, %s1773_s13 }
  0x4c   : > { %v1392_v2 = vld [vmem:[#allocation4 + $0xb8] sm:$0xff]  ;;  %708 = vmatpush.bf16.msra.mxu1 %v1384_v1  ;;  %v1391_v5 = vld [vmem:[#allocation4 + $0xb0] sm:$0xff]  ;;  %v1382_v7 = vld [vmem:[#allocation4 + $0x68] sm:$0xff]  ;;  %s1955_s21 = scalar_lea.vmem [#allocation6], %s1439_s19   ;;  %s1418_s15 = smul.u32 (%p1802_p10), 56, %s1773_s13 }
  0x4d   : > { %736 = vmatpush.bf16.msra.mxu2 %v1392_v2  ;;  %v1390_v8 = vld [vmem:[#allocation4 + $0xa8] sm:$0xff]  ;;  %v1373_v9 = vld [vmem:[#allocation4 + $0x20] sm:$0xff]  ;;  %v1372_v12 = vld [vmem:[#allocation4 + $0x18] sm:$0xff]  ;;  %s891_s18 = ssub.s32 (%p1802_p10), 13, %s890_s8 }
  0x4e   : > { %v1381_v10 = vld [vmem:[#allocation4 + $0x60] sm:$0xff]  ;;  %v1380_v13 = vld [vmem:[#allocation4 + $0x58] sm:$0xff]  ;;  %v1371_v15 = vld [vmem:[#allocation4 + $0x10] sm:$0xff]  ;;  %p892_p8 = scmp.lt.s32.totalorder (%p1802_p10), %s891_s18, 7  ;;  %s1974_s3 = scalar_lea.vmem (%p1802_p10), %s2032_s2, %s1418_s15  }
  0x4f   : > { %681 = vmatpush.bf16.msra.mxu0 %v1375_v3  ;;  %1420 = vmatpush.bf16.msra.mxu3 %v1375_v3  ;;  %v1389_v11 = vld [vmem:[#allocation4 + $0xa0] sm:$0xff]  ;;  %v1388_v14 = vld [vmem:[#allocation4 + $0x98] sm:$0xff]  ;;  %v1379_v16 = vld [vmem:[#allocation4 + $0x50] sm:$0xff] }
  0x50   : > { %709 = vmatpush.bf16.msra.mxu1 %v1383_v4  ;;  %v1387_v17 = vld [vmem:[#allocation4 + $0x90] sm:$0xff]  ;;  %v1370_v18 = vld [vmem:[#allocation4 + $0x8] sm:$0xff]  ;;  %v1369_v21 = vld [vmem:[#allocation4] sm:$0xff] }
  0x51   : > { %737 = vmatpush.bf16.msra.mxu2 %v1391_v5  ;;  %v1378_v19 = vld [vmem:[#allocation4 + $0x48] sm:$0xff]  ;;  %v1377_v22 = vld [vmem:[#allocation4 + $0x40] sm:$0xff]  ;;  %v198_v24 = vld [vmem:[%s1869_s30] sm:$0xff] }
  0x52   : > { %v1386_v20 = vld [vmem:[#allocation4 + $0x88] sm:$0xff]  ;;  %v1385_v23 = vld [vmem:[#allocation4 + $0x80] sm:$0xff]  ;;  %v226_v26 = vld [vmem:[%s1869_s30 + $0xe0] sm:$0xff] }
  0x53   : > { %682 = vmatpush.bf16.msra.mxu0 %v1374_v6  ;;  %1421 = vmatpush.bf16.msra.mxu3 %v1374_v6  ;;  %v205_v25 = vld [vmem:[%s1869_s30 + $0x38] sm:$0xff]  ;;  %v199_v28 = vld [vmem:[%s1869_s30 + $0x8] sm:$0xff]  ;;  %v206_v29 = vld [vmem:[%s1869_s30 + $0x40] sm:$0xff] }
  0x54   : > { %710 = vmatpush.bf16.msra.mxu1 %v1382_v7  ;;  %v233_v27 = vld [vmem:[%s1869_s30 + $0x118] sm:$0xff]  ;;  %v200_v30 = vld [vmem:[%s1869_s30 + $0x10] sm:$0xff]  ;;  %v207_v31 = vld [vmem:[%s1869_s30 + $0x48] sm:$0xff]  ;;  %v247_v34 = vpack.c.bf16 %v205_v25, %v198_v24  ;;  %v248_v36 = vpack.c.bf16 %v206_v29, %v199_v28 }
  0x55   : > { %738 = vmatpush.bf16.msra.mxu2 %v1390_v8  ;;  %v1887_v32 = vld [vmem:[#allocation4 + $0x180] sm:$0xff]  ;;  %v1400_v33 = vld [vmem:[#allocation4 + $0xf8] sm:$0xff]  ;;  %v261_v35 = vpack.c.bf16 %v233_v27, %v226_v26  ;;  %v249_v37 = vpack.c.bf16 %v207_v31, %v200_v30  ;;  %v1399_v40 = vld [vmem:[#allocation4 + $0xf0] sm:$0xff] }
  0x56   : > { %v1408_v38 = vld [vmem:[#allocation4 + $0x138] sm:$0xff]  ;;  %v1407_v41 = vld [vmem:[#allocation4 + $0x130] sm:$0xff]  ;;  %v1398_v43 = vld [vmem:[#allocation4 + $0xe8] sm:$0xff] }
  0x57   : > { %683 = vmatpush.bf16.msra.mxu0 %v1373_v9  ;;  %1422 = vmatpush.bf16.msra.mxu3 %v1373_v9  ;;  %v1889_v39 = vld [vmem:[#allocation4 + $0x178] sm:$0xff]  ;;  %v1893_v42 = vld [vmem:[#allocation4 + $0x170] sm:$0xff]  ;;  %v1406_v44 = vld [vmem:[#allocation4 + $0x128] sm:$0xff] }
  0x58   : > { %711 = vmatpush.bf16.msra.mxu1 %v1381_v10  ;;  %v1896_v45 = vld [vmem:[#allocation4 + $0x168] sm:$0xff]  ;;  %v1397_v46 = vld [vmem:[#allocation4 + $0xe0] sm:$0xff]  ;;  %v214_v53 = vld [vmem:[%s1869_s30 + $0x80] sm:$0xff] }
  0x59   : > { %739 = vmatpush.bf16.msra.mxu2 %v1389_v11  ;;  %v1405_v47 = vld [vmem:[#allocation4 + $0x120] sm:$0xff]  ;;  %v213_v51 = vld [vmem:[%s1869_s30 + $0x78] sm:$0xff]  ;;  %v1396_v56 = vld [vmem:[#allocation4 + $0xd8] sm:$0xff] }
  0x5a   : > { %v212_v48 = vld [vmem:[%s1869_s30 + $0x70] sm:$0xff]  ;;  %v219_v49 = vld [vmem:[%s1869_s30 + $0xa8] sm:$0xff]  ;;  %v221_v54 = vld [vmem:[%s1869_s30 + $0xb8] sm:$0xff] }
  0x5b   : > { %684 = vmatpush.bf16.msra.mxu0 %v1372_v12  ;;  %1423 = vmatpush.bf16.msra.mxu3 %v1372_v12  ;;  %v240_v50 = vld [vmem:[%s1869_s30 + $0x150] sm:$0xff]  ;;  %v254_v57 = vpack.c.bf16 %v219_v49, %v212_v48  ;;  %v256_v60 = vpack.c.bf16 %v221_v54, %v214_v53  ;;  %v1404_v61 = vld [vmem:[#allocation4 + $0x118] sm:$0xff]  ;;  %v1395_v63 = vld [vmem:[#allocation4 + $0xd0] sm:$0xff] }
  0x5c   : > { %712 = vmatpush.bf16.msra.mxu1 %v1380_v13  ;;  %v220_v52 = vld [vmem:[%s1869_s30 + $0xb0] sm:$0xff]  ;;  %v268_v58 = vpack.c.bf16 %v240_v50, %v240_v50  ;;  %v1412_v62 = vld [vmem:[#allocation4 + $0x158] sm:$0xff]  ;;  %v1403_v0 = vld [vmem:[#allocation4 + $0x110] sm:$0xff] }
  0x5d   : > { %740 = vmatpush.bf16.msra.mxu2 %v1388_v14  ;;  %v1413_v55 = vld [vmem:[#allocation4 + $0x160] sm:$0xff]  ;;  %v255_v59 = vpack.c.bf16 %v220_v52, %v213_v51  ;;  %v1411_v1 = vld [vmem:[#allocation4 + $0x150] sm:$0xff]  ;;  %v1394_v2 = vld [vmem:[#allocation4 + $0xc8] sm:$0xff] }
  0x5e   : > { %v1402_v3 = vld [vmem:[#allocation4 + $0x108] sm:$0xff]  ;;  %v1393_v5 = vld [vmem:[#allocation4 + $0xc0] sm:$0xff]  ;;  %v234_v8 = vld [vmem:[%s1869_s30 + $0x120] sm:$0xff] }
  0x5f   : > { %685 = vmatpush.bf16.msra.mxu0 %v1371_v15  ;;  %1424 = vmatpush.bf16.msra.mxu3 %v1371_v15  ;;  %v1410_v4 = vld [vmem:[#allocation4 + $0x148] sm:$0xff]  ;;  %v1401_v6 = vld [vmem:[#allocation4 + $0x100] sm:$0xff]  ;;  %v202_v14 = vld [vmem:[%s1869_s30 + $0x20] sm:$0xff] }
  0x60   : > { %713 = vmatpush.bf16.msra.mxu1 %v1379_v16  ;;  %v227_v7 = vld [vmem:[%s1869_s30 + $0xe8] sm:$0xff]  ;;  %v201_v9 = vld [vmem:[%s1869_s30 + $0x18] sm:$0xff]  ;;  %v208_v10 = vld [vmem:[%s1869_s30 + $0x50] sm:$0xff] }
  0x61   : > { %741 = vmatpush.bf16.msra.mxu2 %v1387_v17  ;;  %v228_v11 = vld [vmem:[%s1869_s30 + $0xf0] sm:$0xff]  ;;  %v235_v12 = vld [vmem:[%s1869_s30 + $0x128] sm:$0xff]  ;;  %v209_v15 = vld [vmem:[%s1869_s30 + $0x58] sm:$0xff]  ;;  %v250_v16 = vpack.c.bf16 %v208_v10, %v201_v9  ;;  %v262_v17 = vpack.c.bf16 %v234_v8, %v227_v7 }
  0x62   : > { %v1409_v13 = vld [vmem:[#allocation4 + $0x140] sm:$0xff]  ;;  %v229_v30 = vld [vmem:[%s1869_s30 + $0xf8] sm:$0xff]  ;;  %v246_v52 = vld [vmem:[%s1869_s30 + $0x180] sm:$0xff] }
  0x63   : > { %686 = vmatpush.bf16.msra.mxu0 %v1370_v18  ;;  %1425 = vmatpush.bf16.msra.mxu3 %v1370_v18  ;;  %v263_v18 = vpack.c.bf16 %v235_v12, %v228_v11  ;;  %v216_v24 = vld [vmem:[%s1869_s30 + $0x90] sm:$0xff]  ;;  %v223_v25 = vld [vmem:[%s1869_s30 + $0xc8] sm:$0xff]  ;;  %v245_v53 = vld [vmem:[%s1869_s30 + $0x178] sm:$0xff] }
  0x64   : > { %714 = vmatpush.bf16.msra.mxu1 %v1378_v19  ;;  %v251_v19 = vpack.c.bf16 %v209_v15, %v202_v14  ;;  %v258_v29 = vpack.c.bf16 %v223_v25, %v216_v24  ;;  %v236_v31 = vld [vmem:[%s1869_s30 + $0x130] sm:$0xff] }
  0x65   : > { %742 = vmatpush.bf16.msra.mxu2 %v1386_v20  ;;  %v215_v20 = vld [vmem:[%s1869_s30 + $0x88] sm:$0xff]  ;;  %v232_v54 = vld [vmem:[%s1869_s30 + $0x110] sm:$0xff] }
  0x67   : > { %687 = vmatpush.bf16.msra.mxu0 %v1369_v21  ;;  %1426 = vmatpush.bf16.msra.mxu3 %v1369_v21  ;;  %v222_v21 = vld [vmem:[%s1869_s30 + $0xc0] sm:$0xff] }
  0x68   : > { %715 = vmatpush.bf16.msra.mxu1 %v1377_v22  ;;  %v241_v22 = vld [vmem:[%s1869_s30 + $0x158] sm:$0xff]  ;;  %v257_v26 = vpack.c.bf16 %v222_v21, %v215_v20 }
  0x69   : > { %743 = vmatpush.bf16.msra.mxu2 %v1385_v23  ;;  %v242_v23 = vld [vmem:[%s1869_s30 + $0x160] sm:$0xff]  ;;  %v269_v27 = vpack.c.bf16 %v241_v22, %v241_v22 }
  0x6a   : > { %688 = vmatmul.bf16.vlgmr.msra.gmra.mxu0 %v247_v34  ;;  %698 = vmatmul.bf16.vlgmr.msra.gmra.mxu3 %v261_v35  ;;  %v270_v28 = vpack.c.bf16 %v242_v23, %v242_v23  ;;  %v204_v34 = vld [vmem:[%s1869_s30 + $0x30] sm:$0xff]  ;;  %v211_v35 = vld [vmem:[%s1869_s30 + $0x68] sm:$0xff] }
  0x6b   : > { %764 = vmatpush.bf16.msrb.mxu3 %v1400_v33  ;;  %716 = vmatmul.bf16.vlgmr.msra.gmra.mxu1 %v248_v36  ;;  %v224_v33 = vld [vmem:[%s1869_s30 + $0xd0] sm:$0xff]  ;;  %v230_v36 = vld [vmem:[%s1869_s30 + $0x100] sm:$0xff] }
  0x6c   : > { %744 = vmatmul.bf16.vlgmr.msra.gmra.mxu2 %v249_v37  ;;  %792 = vmatpush.bf16.msrb.mxu0 %v1408_v38  ;;  %v237_v37 = vld [vmem:[%s1869_s30 + $0x138] sm:$0xff]  ;;  %v264_v38 = vpack.c.bf16 %v236_v31, %v229_v30 }
  0x6d   : > { %855 = vmatpush.bf16.msrb.mxu2 %v1887_v32  ;;  %1427 = vmatpush.bf16.msrb.mxu1 %v1889_v39 }
  0x6f   : > { %765 = vmatpush.bf16.msrb.mxu3 %v1399_v40  ;;  %v253_v40 = vpack.c.bf16 %v211_v35, %v204_v34 }
  0x70   : > { %793 = vmatpush.bf16.msrb.mxu0 %v1407_v41  ;;  %v265_v41 = vpack.c.bf16 %v237_v37, %v230_v36 }
  0x71   : > { %1428 = vmatpush.bf16.msrb.mxu1 %v1893_v42 }
  0x73   : > { %766 = vmatpush.bf16.msrb.mxu3 %v1398_v43  ;;  %v231_v43 = vld [vmem:[%s1869_s30 + $0x108] sm:$0xff] }
  0x74   : > { %794 = vmatpush.bf16.msrb.mxu0 %v1406_v44  ;;  %v238_v44 = vld [vmem:[%s1869_s30 + $0x140] sm:$0xff] }
  0x75   : > { %1429 = vmatpush.bf16.msrb.mxu1 %v1896_v45  ;;  %v266_v49 = vpack.c.bf16 %v238_v44, %v231_v43 }
  0x77   : > { %767 = vmatpush.bf16.msrb.mxu3 %v1397_v46  ;;  %v225_v46 = vld [vmem:[%s1869_s30 + $0xd8] sm:$0xff] }
  0x78   : > { %795 = vmatpush.bf16.msrb.mxu0 %v1405_v47  ;;  %v244_v47 = vld [vmem:[%s1869_s30 + $0x170] sm:$0xff] }
  0x79   : > { %1430 = vmatpush.bf16.msrb.mxu1 %v1413_v55  ;;  %v272_v51 = vpack.c.bf16 %v244_v47, %v244_v47 }
  0x7a   : > { %693 = vmatmul.bf16.gmra.mxu0 %v254_v57  ;;  %703 = vmatmul.bf16.gmra.mxu3 %v268_v58  ;;  %v210_v57 = vld [vmem:[%s1869_s30 + $0x60] sm:$0xff]  ;;  %v274_v58 = vpack.c.bf16 %v246_v52, %v246_v52 }
  0x7b   : > { %768 = vmatpush.bf16.msrb.mxu3 %v1396_v56  ;;  %721 = vmatmul.bf16.gmra.mxu1 %v255_v59  ;;  %v203_v56 = vld [vmem:[%s1869_s30 + $0x28] sm:$0xff]  ;;  %v273_v59 = vpack.c.bf16 %v245_v53, %v245_v53 }
  0x7c   : > { %749 = vmatmul.bf16.gmra.mxu2 %v256_v60  ;;  %796 = vmatpush.bf16.msrb.mxu0 %v1404_v61  ;;  %v252_v61 = vpack.c.bf16 %v210_v57, %v203_v56 }
  0x7d   : > { %1431 = vmatpush.bf16.msrb.mxu1 %v1412_v62 }
  0x7f   : > { %769 = vmatpush.bf16.msrb.mxu3 %v1395_v63 }
  0x80   : > { %797 = vmatpush.bf16.msrb.mxu0 %v1403_v0 }
  0x81   : > { %1432 = vmatpush.bf16.msrb.mxu1 %v1411_v1 }
  0x83   : > { %770 = vmatpush.bf16.msrb.mxu3 %v1394_v2 }
  0x84   : > { %798 = vmatpush.bf16.msrb.mxu0 %v1402_v3 }
  0x85   : > { %1433 = vmatpush.bf16.msrb.mxu1 %v1410_v4 }
  0x87   : > { %771 = vmatpush.bf16.msrb.mxu3 %v1393_v5 }
  0x88   : > { %799 = vmatpush.bf16.msrb.mxu0 %v1401_v6 }
  0x89   : > { %1434 = vmatpush.bf16.msrb.mxu1 %v1409_v13 }
  0x8a   : > { %772 = vmatmul.bf16.vlgmr.msrb.gmra.mxu3 %v250_v16 }
  0x8b   : > { %1435 = vmatpush.bf16.msra.mxu3 %v1887_v32  ;;  %726 = vmatmul.bf16.gmra.mxu1 %v262_v17  ;;  %v217_v32 = vld [vmem:[%s1869_s30 + $0x98] sm:$0xff] }
  0x8c   : > { %820 = vmatpush.bf16.msra.mxu0 %v1889_v39  ;;  %754 = vmatmul.bf16.gmra.mxu2 %v263_v18  ;;  %v259_v39 = vpack.c.bf16 %v224_v33, %v217_v32 }
  0x8d   : > { %800 = vmatmul.bf16.vlgmr.msrb.gmra.mxu0 %v251_v19 }
  0x90   : > { %821 = vmatpush.bf16.msra.mxu0 %v1893_v42  ;;  %v243_v42 = vld [vmem:[%s1869_s30 + $0x168] sm:$0xff] }
  0x91   : > { %v271_v48 = vpack.c.bf16 %v243_v42, %v243_v42 }
  0x94   : > { %822 = vmatpush.bf16.msra.mxu0 %v1896_v45  ;;  %v218_v45 = vld [vmem:[%s1869_s30 + $0xa0] sm:$0xff] }
  0x95   : > { %v260_v50 = vpack.c.bf16 %v225_v46, %v218_v45 }
  0x98   : > { %823 = vmatpush.bf16.msra.mxu0 %v1413_v55  ;;  %v239_v55 = vld [vmem:[%s1869_s30 + $0x148] sm:$0xff] }
  0x99   : > { %v267_v60 = vpack.c.bf16 %v239_v55, %v232_v54 }
  0x9a   : > { %777 = vmatmul.bf16.gmra.mxu3 %v257_v26 }
  0x9b   : > { %731 = vmatmul.bf16.gmra.mxu1 %v269_v27 }
  0x9c   : > { %824 = vmatpush.bf16.msra.mxu0 %v1412_v62  ;;  %759 = vmatmul.bf16.gmra.mxu2 %v270_v28 }
  0x9d   : > { %805 = vmatmul.bf16.gmra.mxu0 %v258_v29 }
  0xa0   : > { %825 = vmatpush.bf16.msra.mxu0 %v1411_v1 }
  0xa4   : > { %826 = vmatpush.bf16.msra.mxu0 %v1410_v4 }
  0xa8   : > { %827 = vmatpush.bf16.msra.mxu0 %v1409_v13 }
  0xaa   : > { %782 = vmatmul.bf16.gmra.mxu3 %v264_v38 }
  0xab   : > { %833 = vmatmul.bf16.vlgmr.msrb.gmra.mxu1 %v259_v39 }
  0xac   : > { %1353 = vmatmul.msk.bf16.vlgmr.msrb.gmra.mxu2 %vm667_vm0, %v253_v40 }
  0xad   : > { %810 = vmatmul.bf16.gmra.mxu0 %v265_v41 }
  0xba   : > { %787 = vmatmul.bf16.gmra.mxu3 %v271_v48 }
  0xbb   : > { %838 = vmatmul.bf16.gmra.mxu1 %v266_v49 }
  0xbc   : > { %1354 = vmatmul.msk.bf16.gmra.mxu2 %vm667_vm0, %v260_v50 }
  0xbd   : > { %815 = vmatmul.bf16.gmra.mxu0 %v272_v51 }
  0xca   : > { %1356 = vmatmul.msk.bf16.vlgmr.msra.gmra.mxu3 %vm667_vm0, %v274_v58 }
  0xcb   : > { %843 = vmatmul.bf16.gmra.mxu1 %v273_v59 }
  0xcc   : > { %1355 = vmatmul.msk.bf16.gmra.mxu2 %vm667_vm0, %v267_v60 }
  0xcd   : > { %828 = vmatmul.bf16.vlgmr.msra.gmra.mxu0 %v252_v61 }
  0xe7   : > { %v689_v62 = vpop.f32.mrf.mxu0 }
  0xe8   : > { %v717_v63 = vpop.f32.mrf.mxu1 }
  0xe9   : > { %v718_v0 = vadd.f32 %v717_v63, %v689_v62 }
  0xed   : > { %v699_v1 = vpop.f32.mrf.mxu3 }
  0xef   : > { %v745_v2 = vpop.f32.mrf.mxu2  ;;  %v691_v4 = vpop.f32.mrf.mxu0 }
  0xf0   : > { %v746_v3 = vadd.f32 %v745_v2, %v718_v0  ;;  %v719_v5 = vpop.f32.mrf.mxu1 }
  0xf1   : > { %v720_v6 = vadd.f32 %v719_v5, %v691_v4 }
  0xf5   : > { %v1948_v7 = vpop.f32.mrf.mxu3 }
  0xf7   : > { %v747_v8 = vpop.f32.mrf.mxu2  ;;  %v694_v10 = vpop.f32.mrf.mxu0 }
  0xf8   : > { %v1950_v9 = vadd.f32 %v747_v8, %v720_v6  ;;  %v722_v11 = vpop.f32.mrf.mxu1 }
  0xf9   : > { %v723_v39 = vadd.f32 %v722_v11, %v694_v10 }
  0xfd   : > { %v704_v12 = vpop.f32.mrf.mxu3 }
  0xff   : > { %v750_v13 = vpop.f32.mrf.mxu2  ;;  %v696_v14 = vpop.f32.mrf.mxu0 }
 0x100   : > { %v724_v15 = vpop.f32.mrf.mxu1  ;;  %v751_v41 = vadd.f32 %v750_v13, %v723_v39 }
 0x101   : > { %v725_v47 = vadd.f32 %v724_v15, %v696_v14 }
 0x105   : > { %v706_v16 = vpop.f32.mrf.mxu3 }
 0x107   : > { %v752_v17 = vpop.f32.mrf.mxu2 }
 0x108   : > { %v727_v18 = vpop.f32.mrf.mxu1  ;;  %v753_v49 = vadd.f32 %v752_v17, %v725_v47 }
 0x109   : > { %v728_v58 = vadd.f32 %v727_v18, %v699_v1 }
 0x10a   : > { %v801_v19 = vpop.f32.mrf.mxu0 }
 0x10d   : > { %v773_v20 = vpop.f32.mrf.mxu3 }
 0x10e   : > { %v774_v60 = vadd.f32 %v773_v20, %v746_v3 }
 0x10f   : > { %v755_v21 = vpop.f32.mrf.mxu2 }
 0x110   : > { %v729_v22 = vpop.f32.mrf.mxu1  ;;  %v756_v62 = vadd.f32 %v755_v21, %v728_v58  ;;  %v802_v8 = vadd.f32 %v801_v19, %v774_v60 }
 0x111   : > { %v730_v1 = vadd.f32 %v729_v22, %v1948_v7 }
 0x112   : > { %v1952_v23 = vpop.f32.mrf.mxu0 }
 0x115   : > { %v775_v24 = vpop.f32.mrf.mxu3 }
 0x117   : > { %v757_v25 = vpop.f32.mrf.mxu2 }
 0x118   : > { %v732_v26 = vpop.f32.mrf.mxu1  ;;  %v758_v17 = vadd.f32 %v757_v25, %v730_v1 }
 0x119   : > { %v733_v57 = vadd.f32 %v732_v26, %v704_v12  ;;  %v776_v12 = vadd.f32 %v775_v24, %v1950_v9 }
 0x11a   : > { %v806_v27 = vpop.f32.mrf.mxu0 }
 0x11d   : > { %v778_v28 = vpop.f32.mrf.mxu3 }
 0x11e   : > { %v779_v44 = vadd.f32 %v778_v28, %v751_v41  ;;  %v804_v28 = vadd.f32 %v1952_v23, %v776_v12 }
 0x11f   : > { %v760_v29 = vpop.f32.mrf.mxu2 }
 0x120   : > { %v734_v30 = vpop.f32.mrf.mxu1  ;;  %v807_v48 = vadd.f32 %v806_v27, %v779_v44  ;;  %v761_v61 = vadd.f32 %v760_v29, %v733_v57 }
 0x122   : > { %v808_v31 = vpop.f32.mrf.mxu0 }
 0x125   : > { %v780_v32 = vpop.f32.mrf.mxu3 }
 0x126   : > { %v781_v53 = vadd.f32 %v780_v32, %v753_v49 }
 0x127   : > { %v762_v33 = vpop.f32.mrf.mxu2 }
 0x128   : > { %v834_v34 = vpop.f32.mrf.mxu1  ;;  %v809_v59 = vadd.f32 %v808_v31, %v781_v53 }
 0x129   : > { %v835_v50 = vadd.f32 %v834_v34, %v807_v48 }
 0x12a   : > { %v811_v35 = vpop.f32.mrf.mxu0 }
 0x12d   : > { %v783_v36 = vpop.f32.mrf.mxu3 }
 0x12e   : > { %v784_v5 = vadd.f32 %v783_v36, %v756_v62 }
 0x12f   : > { %v857_v37 = vpop.f32.mrf.mxu2 }
 0x130   : > { %v836_v38 = vpop.f32.mrf.mxu1  ;;  %v812_v3 = vadd.f32 %v811_v35, %v784_v5 }
 0x131   : > { %v837_v63 = vadd.f32 %v836_v38, %v809_v59 }
 0x132   : > { %v813_v40 = vpop.f32.mrf.mxu0 }
 0x135   : > { %v785_v42 = vpop.f32.mrf.mxu3 }
 0x136   : > { %v786_v26 = vadd.f32 %v785_v42, %v758_v17 }
 0x137   : > { %v859_v43 = vpop.f32.mrf.mxu2 }
 0x138   : > { %v839_v45 = vpop.f32.mrf.mxu1  ;;  %v814_v9 = vadd.f32 %v813_v40, %v786_v26 }
 0x139   : > { %v840_v18 = vadd.f32 %v839_v45, %v812_v3 }
 0x13a   : > { %v816_v46 = vpop.f32.mrf.mxu0 }
 0x13d   : > { %v788_v51 = vpop.f32.mrf.mxu3 }
 0x13e   : > { %v789_v2 = vadd.f32 %v788_v51, %v761_v61 }
 0x13f   : > { %v862_v52 = vpop.f32.mrf.mxu2 }
 0x140   : > { %v863_v54 = vadd.f32 %v862_v52, %v835_v50  ;;  %v841_v55 = vpop.f32.mrf.mxu1  ;;  %v817_v14 = vadd.f32 %v816_v46, %v789_v2 }
 0x141   : > { %v842_v30 = vadd.f32 %v841_v55, %v814_v9 }
 0x142   : > { %878 = vst [vmem:[%s1955_s21 + $0x10] sm:$0xff] %v863_v54  ;;  %v818_v56 = vpop.f32.mrf.mxu0 }
 0x145   : > { %v790_v0 = vpop.f32.mrf.mxu3 }
 0x147   : > { %v864_v4 = vpop.f32.mrf.mxu2 }
 0x148   : > { %v865_v6 = vadd.f32 %v864_v4, %v837_v63  ;;  %v844_v10 = vpop.f32.mrf.mxu1 }
 0x149   : > { %v845_v16 = vadd.f32 %v844_v10, %v817_v14 }
 0x14a   : > { %879 = vst [vmem:[%s1955_s21 + $0x18] sm:$0xff] %v865_v6  ;;  %v829_v11 = vpop.f32.mrf.mxu0 }
 0x14b   : > { %v830_v13 = vadd.f32 %v829_v11, %v802_v8 }
 0x14d   : > { %v858_v15 = vadd.f32 %v857_v37, %v830_v13  ;;  %v872_v20 = vpop.f32.mrf.mxu3 }
 0x14e   : > { %v873_v21 = vadd.f32 %v872_v20, %v845_v16 }
 0x14f   : > { %876 = vst [vmem:[%s1955_s21] sm:$0xff] %v858_v15  ;;  %v867_v19 = vpop.f32.mrf.mxu2 }
 0x150   : > { %v868_v27 = vadd.f32 %v867_v19, %v840_v18  ;;  %882 = vst [vmem:[%s1955_s21 + $0x30] sm:$0xff] %v873_v21  ;;  %v846_v7 = vpop.f32.mrf.mxu1 }
 0x152   : > { %880 = vst [vmem:[%s1955_s21 + $0x20] sm:$0xff] %v868_v27  ;;  %v831_v22 = vpop.f32.mrf.mxu0 }
 0x153   : > { %v832_v29 = vadd.f32 %v831_v22, %v804_v28 }
 0x155   : > { %v860_v24 = vadd.f32 %v859_v43, %v832_v29  ;;  %v874_v25 = vpop.f32.mrf.mxu3 }
 0x156   : > { %889 = sbr.rel (!%p1802_p10) target bundleno = 401 (0x191), region = 40 }
 0x157   : > { %877 = vst [vmem:[%s1955_s21 + $0x8] sm:$0xff] %v860_v24  ;;  %v869_v31 = vpop.f32.mrf.mxu2 }
 0x158   : > { %v870_v32 = vadd.f32 %v869_v31, %v842_v30 }
 0x15a   : > { %881 = vst [vmem:[%s1955_s21 + $0x28] sm:$0xff] %v870_v32 }
 0x15b   : > { %s2053_s18 = smov (!%p892_p8, %s891_s18), 7 }
 0x15c   : > { %s1357_s4 = sshll.u32 %s2053_s18, 3 }
 0x15d   : > { %p1360_p2 = scmp.eq.s32.totalorder %s1357_s4, 0 }
 0x15e   : > { %1554 = sdivrem.u32 (!%p1360_p2), %s2053_s18, 7 }
 0x15f   : > { %900 = sbr.rel (%p1360_p2) target bundleno = 401 (0x191), region = 44 }
 0x167   : > { %s1980_s20 = spop.drf %1554 }
 0x168   : > { %s1556_s5 = spop.drf %1554  ;;  %p1361_p10 = scmp.le.s32.totalorder %s1980_s20, 0 }
 0x169   : > { %s2041_s13 = smov (!%p1361_p10), %s1974_s3  ;;  %s2042_s6 = smov (!%p1361_p10), %s1955_s21 }
 0x16a   : > { %1090 = sbr.rel (%p1361_p10) target bundleno = 375 (0x177), region = 126  ;;  %s1989_s7 = smov (!%p1361_p10), 0  }
 0x16b   : > { %s1991_s9 = smov (!%p1361_p10), 0  }
 0x16f LB: >> { %v977_v23 = vld [vmem:[%s1707_s6] sm:$0xff]  ;;  %v979_v33 = vld [vmem:[%s1707_s6 + $0x8] sm:$0xff]  ;;  %v981_v34 = vld [vmem:[%s1707_s6 + $0x10] sm:$0xff]  ;;  %s991_s16 = sadd.s32 1, %s1711_s7  ;;  %s971_s9 = sadd.s32 1, %s1715_s9   ;;  %s1715_s9 = sphi %s1991_s9, %s971_s9   ;;  %s1711_s7 = sphi %s1989_s7, %s2043_s7   ;;  %s1707_s6 = sphi %s2042_s6, %s996_s6   ;;  %s1703_s13 = sphi %s2041_s13, %s997_s13  }
 0x170   : >> { %978 = vst [vmem:[%s1703_s13] sm:$0xff] %v977_v23  ;;  %v983_v35 = vld [vmem:[%s1707_s6 + $0x18] sm:$0xff]  ;;  %p992_p7 = scmp.ge.s32.totalorder %s991_s16, %s1980_s20  ;;  %v985_v36 = vld [vmem:[%s1707_s6 + $0x20] sm:$0xff]  ;;  %v987_v37 = vld [vmem:[%s1707_s6 + $0x28] sm:$0xff]  ;;  %p970_p9 = scmp.ge.s32.totalorder %s971_s9, %s1980_s20 }
 0x171   : >> { %980 = vst [vmem:[%s1703_s13 + $0x8] sm:$0xff] %v979_v33  ;;  %v989_v38 = vld [vmem:[%s1707_s6 + $0x30] sm:$0xff] }
 0x172   : >> { %982 = vst [vmem:[%s1703_s13 + $0x10] sm:$0xff] %v981_v34  ;;  %s2055_s16 = smov (%p992_p7, %s991_s16), 0  ;;  %973 = sbr.rel (!%p970_p9) target bundleno = 367 (0x16f), region = 132 }
 0x173   : >> { %984 = vst [vmem:[%s1703_s13 + $0x18] sm:$0xff] %v983_v35  ;;  %s994_s23 = smul.u32 56, %s2055_s16  ;;  %s2043_s7 = smov %s2055_s16 }
 0x174   : >> { %986 = vst [vmem:[%s1703_s13 + $0x20] sm:$0xff] %v985_v36 }
 0x175   : >> { %988 = vst [vmem:[%s1703_s13 + $0x28] sm:$0xff] %v987_v37  ;;  %s996_s6 = scalar_lea.vmem %s1955_s21, %s994_s23 [#allocation6]  }
 0x176   : >> { %990 = vst [vmem:[%s1703_s13 + $0x30] sm:$0xff] %v989_v38  ;;  %s997_s13 = scalar_lea.vmem %s1974_s3, %s994_s23  }
 0x177 PF: > { %1557 = sdivrem.u32 %s2053_s18, 7 }
 0x178   : > { %s1362_s24 = smul.u32 56, %s1980_s20 }
 0x17a   : > { %s2012_s25 = scalar_lea.vmem %s1955_s21, %s1362_s24 [#allocation6]   ;;  %s1004_s27 = scalar_lea.vmem %s1974_s3, %s1362_s24  }
 0x180   : > { %s1558_s12 = spop.drf %1557 }
 0x181   : > { %s1559_s28 = spop.drf %1557 }
 0x182   : > { %p1364_p12 = scmp.le.s32.totalorder %s1559_s28, 0 }
 0x183   : > { %s1717_s29 = smov (!%p1364_p12), %s1004_s27   ;;  %s1721_s30 = smov (!%p1364_p12), %s2012_s25  }
 0x184   : > { %1104 = sbr.rel (%p1364_p12) target bundleno = 401 (0x191), region = 137  ;;  %s1725_s19 = smov (!%p1364_p12), 0  }
 0x185   : > { %s1729_s8 = smov (!%p1364_p12), 0  }
 0x189 LB: >> { %v1014_v39 = vld [vmem:[%s1723_s30] sm:$0xff]  ;;  %s1016_s21 = sadd.s32 1, %s1727_s19  ;;  %s1008_s8 = sadd.s32 1, %s1731_s8   ;;  %s1731_s8 = sphi %s1729_s8, %s1008_s8   ;;  %s1727_s19 = sphi %s1725_s19, %s1726_s19   ;;  %s1723_s30 = sphi %s1721_s30, %s1021_s30   ;;  %s1719_s29 = sphi %s1717_s29, %s1022_s29  }
 0x18a   : >> { %1015 = vst [vmem:[%s1719_s29] sm:$0xff] %v1014_v39  ;;  %p1017_p13 = scmp.ge.s32.totalorder %s1016_s21, %s1559_s28  ;;  %p1007_p0 = scmp.ge.s32.totalorder %s1008_s8, %s1559_s28 }
 0x18c   : >> { %s2057_s21 = smov (%p1017_p13, %s1016_s21), 0  ;;  %1010 = sbr.rel (!%p1007_p0) target bundleno = 393 (0x189), region = 143 }
 0x18d   : >> { %s1365_s15 = sshll.u32 %s2057_s21, 3  ;;  %s1726_s19 = smov %s2057_s21  }
 0x18e   : >> { %s1021_s30 = scalar_lea.vmem %s2012_s25, %s1365_s15 [#allocation6]   ;;  %s1022_s29 = scalar_lea.vmem %s1004_s27, %s1365_s15  }
 0x191 PF: > { %p13_p1 = scmp.ge.s32.totalorder %s1776_s14, 4   ;;  %s2044_s9 = smov %s1691_s10 }
 0x192   : > { %s2045_s10 = smov %s1695_s11  ;;  %s2046_s11 = smov %s1786_s17 }
 0x193   : > { %s2047_s12 = smov %s1776_s14  ;;  %15 = sbr.rel (!%p13_p1) target bundleno = 4 (0x4), region = 154 }
 0x198   :  { %1038 = vsyncpa [#allocation3], 1 }
 0x199   :  { %1040 = vsyncpa [#allocation3 + $0x1], 1 }
 0x19a   :  { %1041 = vsyncpa [#allocation5], 1 }

</bundles_post_ra>
